<compile_context>
chip_gen: v6e
topology: v6e:2x2x1
jax: 0.10.0
libtpu: 0.0.40
codegen_flags: <defaults>
</compile_context>

<pallas_src>
import functools

import jax
import jax.numpy as jnp
from jax.experimental import pallas as pl
from jax.experimental.pallas import tpu as pltpu

BN_EPS = 1e-5


# --------------------------------------------------------------------------
# Stage 1: h = x @ W1  (tiled, f32 accumulator)  +  per-column sum / sumsq
# --------------------------------------------------------------------------
def _stage1_kernel(x_ref, w1_ref, h_ref, stats_ref, acc_ref):
    # grid = (n_h, n_m, n_k); j = hidden tile, m = batch tile, k = input tile
    m = pl.program_id(1)
    k = pl.program_id(2)
    nk = pl.num_programs(2)

    @pl.when(k == 0)
    def _():
        acc_ref[...] = jnp.zeros_like(acc_ref)

    @pl.when((m == 0) & (k == 0))
    def _():
        stats_ref[...] = jnp.zeros_like(stats_ref)

    acc_ref[...] += jnp.dot(
        x_ref[...], w1_ref[...], preferred_element_type=jnp.float32
    )

    @pl.when(k == nk - 1)
    def _():
        acc = acc_ref[...]
        h_ref[...] = acc.astype(h_ref.dtype)
        # BatchNorm statistics accumulated in f32 across batch tiles.
        stats_ref[0:1, :] += jnp.sum(acc, axis=0, keepdims=True)
        stats_ref[1:2, :] += jnp.sum(acc * acc, axis=0, keepdims=True)


# --------------------------------------------------------------------------
# Stage 2: BN (folded scale/shift) -> ReLU -> h @ W2 + b2  (tiled)
# --------------------------------------------------------------------------
def _stage2_kernel(h_ref, stats_ref, gamma_ref, beta_ref, w2_ref, b2_ref,
                   o_ref, acc_ref, *, batch, eps):
    # grid = (n_m, n_n, n_l); m = batch tile, n = output tile, l = hidden tile
    l = pl.program_id(2)
    nl = pl.num_programs(2)

    @pl.when(l == 0)
    def _():
        acc_ref[...] = jnp.zeros_like(acc_ref)

    inv_b = 1.0 / batch
    s = stats_ref[0:1, :]                      # (1, th) f32 column sums
    ss = stats_ref[1:2, :]                     # (1, th) f32 column sum-of-squares
    mean = s * inv_b
    var = ss * inv_b - mean * mean             # biased batch variance
    scale = gamma_ref[...] * jax.lax.rsqrt(var + eps)   # EUP
    shift = beta_ref[...] - mean * scale

    # Folded BN (one mul + one add per element) + ReLU, all in f32.
    hn = h_ref[...].astype(jnp.float32) * scale + shift
    hn = jnp.maximum(hn, 0.0).astype(w2_ref.dtype)

    acc_ref[...] += jnp.dot(hn, w2_ref[...], preferred_element_type=jnp.float32)

    @pl.when(l == nl - 1)
    def _():
        o_ref[...] = (acc_ref[...] + b2_ref[...]).astype(o_ref.dtype)


# --------------------------------------------------------------------------
# Wrapper
# --------------------------------------------------------------------------
def _pick_tile(dim, cap, align):
    """Largest tile <= cap that is a multiple of `align` and divides `dim`.
    Falls back to the full dim (always a legal block) if none exists."""
    if dim <= cap:
        return dim
    t = (cap // align) * align
    while t >= align:
        if dim % t == 0:
            return t
        t -= align
    return dim


def _nbytes(shape, dtype):
    n = 1
    for s in shape:
        n *= int(s)
    return n * jnp.dtype(dtype).itemsize


def mlp_forward(x, w1, gamma, beta, w2, b2, *, eps=BN_EPS,
                compute_dtype=jnp.bfloat16,
                block_m=512, block_k=1024, block_h=512, block_n=512):
    """Forward pass of the BarlowTwins projector MLP.

    x: (B, Din) f32; w1: (Din, H); gamma/beta: (H,) or (1, H);
    w2: (H, Dout); b2: (Dout,) or (1, Dout).  Returns (B, Dout) f32.
    """
    B, Din = x.shape
    H = w1.shape[1]
    Dout = w2.shape[1]

    xc = x.astype(compute_dtype)
    w1c = w1.astype(compute_dtype)
    w2c = w2.astype(compute_dtype)
    gamma2 = jnp.asarray(gamma, jnp.float32).reshape(1, H)
    beta2 = jnp.asarray(beta, jnp.float32).reshape(1, H)
    b22 = jnp.asarray(b2, jnp.float32).reshape(1, Dout)

    tm = _pick_tile(B, block_m, 8)
    tk = _pick_tile(Din, block_k, 128)
    th = _pick_tile(H, block_h, 128)
    tn = _pick_tile(Dout, block_n, 128)

    cdt_bytes = jnp.dtype(compute_dtype).itemsize

    # ---------------- Stage 1: matmul1 + BN statistics ----------------
    h, stats = pl.pallas_call(
        _stage1_kernel,
        out_shape=(
            jax.ShapeDtypeStruct((B, H), compute_dtype),   # h
            jax.ShapeDtypeStruct((8, H), jnp.float32),     # rows 0/1 = sum, sumsq
        ),
        grid_spec=pltpu.PrefetchScalarGridSpec(
            num_scalar_prefetch=0,
            grid=(H // th, B // tm, Din // tk),
            in_specs=[
                pl.BlockSpec((tm, tk), lambda j, m, k: (m, k)),   # x
                pl.BlockSpec((tk, th), lambda j, m, k: (k, j)),   # w1
            ],
            out_specs=(
                pl.BlockSpec((tm, th), lambda j, m, k: (m, j)),   # h
                pl.BlockSpec((8, th), lambda j, m, k: (0, j)),    # stats (resident per j)
            ),
            scratch_shapes=[pltpu.VMEM((tm, th), jnp.float32)],
        ),
        compiler_params=pltpu.CompilerParams(
            # hidden-tile axis is independent (TC-shardable); batch & K axes
            # are revisit/reduction axes for stats and the accumulator.
            dimension_semantics=("parallel", "arbitrary", "arbitrary"),
            vmem_limit_bytes=32 * 1024 * 1024,
        ),
        cost_estimate=pl.CostEstimate(
            flops=2 * B * Din * H + 3 * B * H,
            transcendentals=0,
            bytes_accessed=_nbytes((B, Din), compute_dtype)
            + _nbytes((Din, H), compute_dtype)
            + _nbytes((B, H), compute_dtype)
            + _nbytes((8, H), jnp.float32),
        ),
    )(xc, w1c)

    # ---------------- Stage 2: BN scale/shift + ReLU + matmul2 + bias ----------------
    kernel2 = functools.partial(_stage2_kernel, batch=float(B), eps=float(eps))
    out = pl.pallas_call(
        kernel2,
        out_shape=jax.ShapeDtypeStruct((B, Dout), jnp.float32),
        grid_spec=pltpu.PrefetchScalarGridSpec(
            num_scalar_prefetch=0,
            grid=(B // tm, Dout // tn, H // th),
            in_specs=[
                pl.BlockSpec((tm, th), lambda m, n, l: (m, l)),   # h
                pl.BlockSpec((8, th), lambda m, n, l: (0, l)),    # stats
                pl.BlockSpec((1, th), lambda m, n, l: (0, l)),    # gamma
                pl.BlockSpec((1, th), lambda m, n, l: (0, l)),    # beta
                pl.BlockSpec((th, tn), lambda m, n, l: (l, n)),   # w2
                pl.BlockSpec((1, tn), lambda m, n, l: (0, n)),    # b2
            ],
            out_specs=pl.BlockSpec((tm, tn), lambda m, n, l: (m, n)),
            scratch_shapes=[pltpu.VMEM((tm, tn), jnp.float32)],
        ),
        compiler_params=pltpu.CompilerParams(
            dimension_semantics=("parallel", "parallel", "arbitrary"),
            vmem_limit_bytes=32 * 1024 * 1024,
        ),
        cost_estimate=pl.CostEstimate(
            flops=2 * B * H * Dout + 3 * B * H,
            transcendentals=H,
            bytes_accessed=_nbytes((B, H), compute_dtype)
            + _nbytes((H, Dout), compute_dtype)
            + _nbytes((B, Dout), jnp.float32)
            + 4 * _nbytes((1, H), jnp.float32),
        ),
    )(h, stats, gamma2, beta2, w2c, b22)

    return out


# --------------------------------------------------------------------------
# Pure-JAX reference (PyTorch training-mode semantics)
# --------------------------------------------------------------------------
def reference_forward(x, w1, gamma, beta, w2, b2, eps=BN_EPS):
    h = x @ w1
    mean = jnp.mean(h, axis=0, keepdims=True)
    var = jnp.mean((h - mean) ** 2, axis=0, keepdims=True)
    h = (h - mean) / jnp.sqrt(var + eps)
    h = h * gamma.reshape(1, -1) + beta.reshape(1, -1)
    h = jnp.maximum(h, 0.0)
    return h @ w2 + b2.reshape(1, -1)


if __name__ == "__main__":
    # Small shapes consistent with the module, but MXU/lane-aligned
    # (all dims multiples of 128) so the output is lane-dense and the grid
    # (2 tiles per axis with the caps below) actually exercises the pipeline.
    batch, input_dim, hidden_size, output_dim = 256, 256, 512, 256

    key = jax.random.PRNGKey(0)
    kx, kw1, kw2, kb2 = jax.random.split(key, 4)

    x = jax.random.normal(kx, (batch, input_dim), dtype=jnp.float32)
    w1 = jax.random.normal(kw1, (input_dim, hidden_size), dtype=jnp.float32) * 0.05
    gamma = jnp.ones((hidden_size,), dtype=jnp.float32)     # BatchNorm1d weight
    beta = jnp.zeros((hidden_size,), dtype=jnp.float32)     # BatchNorm1d bias
    w2 = jax.random.normal(kw2, (hidden_size, output_dim), dtype=jnp.float32) * 0.05
    b2 = jax.random.normal(kb2, (output_dim,), dtype=jnp.float32) * 0.05

    ref = reference_forward(x, w1, gamma, beta, w2, b2)

    # Small tile caps so every grid has >1 step (stats accumulation,
    # K-reduction accumulators and pl.when init/finalize all get exercised).
    tile_kwargs = dict(block_m=128, block_k=128, block_h=256, block_n=128)

    # f32 compute path: tight-tolerance correctness check of the structure.
    out_f32 = mlp_forward(x, w1, gamma, beta, w2, b2,
                          compute_dtype=jnp.float32, **tile_kwargs)
    out_f32 = jax.block_until_ready(out_f32)
    assert out_f32.shape == (batch, output_dim)
    assert jnp.allclose(out_f32, ref, atol=2e-3, rtol=2e-3), float(
        jnp.max(jnp.abs(out_f32 - ref)))

    # bf16 compute path (default, MXU-friendly): relaxed tolerance vs f32 ref.
    out_bf16 = mlp_forward(x, w1, gamma, beta, w2, b2,
                           compute_dtype=jnp.bfloat16, **tile_kwargs)
    out_bf16 = jax.block_until_ready(out_bf16)
    assert out_bf16.shape == (batch, output_dim)
    assert jnp.allclose(out_bf16, ref, atol=8e-2, rtol=8e-2), float(
        jnp.max(jnp.abs(out_bf16 - ref)))

    # TODO(synk): BatchNorm1d running_mean/running_var updates (training
    # side-effect) are not emitted; only the forward output is produced.

    print("KERNEL_OK")
</pallas_src>

<mosaic_0001>
module attributes {stable_mosaic.version = 11 : i64} {
  func.func @_stage1_kernel(%arg0: i32, %arg1: i32, %arg2: i32, %arg3: memref<128x128xf32, #tpu.memory_space<vmem>>, %arg4: memref<128x256xf32, #tpu.memory_space<vmem>>, %arg5: memref<128x256xf32, #tpu.memory_space<vmem>>, %arg6: memref<8x256xf32, #tpu.memory_space<vmem>>, %arg7: memref<128x256xf32, #tpu.memory_space<vmem>>) attributes {dimension_semantics = [#tpu.dimension_semantics<parallel>, #tpu.dimension_semantics<arbitrary>, #tpu.dimension_semantics<arbitrary>], iteration_bounds = array<i64: 2, 2, 2>, scalar_prefetch = 0 : i64, scratch_operands = 1 : i64, tpu.core_type = #tpu.core_type<tc>, window_params = [{transform_indices = @transform_0, window_bounds = array<i64: 128, 128>}, {transform_indices = @transform_1, window_bounds = array<i64: 128, 256>}, {transform_indices = @transform_2, window_bounds = array<i64: 128, 256>}, {transform_indices = @transform_3, window_bounds = array<i64: 8, 256>}]} {
    %c0_i32 = arith.constant 0 : i32
    %0 = arith.cmpi eq, %arg2, %c0_i32 : i32
    %1 = arith.extui %0 : i1 to i32
    %c0_i32_0 = arith.constant 0 : i32
    %2 = arith.cmpi ne, %1, %c0_i32_0 : i32
    scf.if %2 {
      %cst_12 = arith.constant 0.000000e+00 : f32
      %17 = vector.broadcast %cst_12 : f32 to vector<128x256xf32>
      %c0_13 = arith.constant 0 : index
      %c0_14 = arith.constant 0 : index
      %18 = vector.load %arg7[%c0_13, %c0_14] : memref<128x256xf32, #tpu.memory_space<vmem>>, vector<128x256xf32>
      tpu.vector_store %arg7[%c0_13, %c0_14], %17 {strides = array<i32>} : memref<128x256xf32, #tpu.memory_space<vmem>>, vector<128x256xf32>,
    } else {
    }
    %c0_i32_1 = arith.constant 0 : i32
    %3 = arith.cmpi eq, %arg1, %c0_i32_1 : i32
    %c0_i32_2 = arith.constant 0 : i32
    %4 = arith.cmpi eq, %arg2, %c0_i32_2 : i32
    %5 = arith.andi %3, %4 : i1
    %6 = arith.extui %5 : i1 to i32
    %c0_i32_3 = arith.constant 0 : i32
    %7 = arith.cmpi ne, %6, %c0_i32_3 : i32
    scf.if %7 {
      %cst_12 = arith.constant 0.000000e+00 : f32
      %17 = vector.broadcast %cst_12 : f32 to vector<8x256xf32>
      %c0_13 = arith.constant 0 : index
      %c0_14 = arith.constant 0 : index
      %18 = vector.load %arg6[%c0_13, %c0_14] : memref<8x256xf32, #tpu.memory_space<vmem>>, vector<8x256xf32>
      tpu.vector_store %arg6[%c0_13, %c0_14], %17 {strides = array<i32>} : memref<8x256xf32, #tpu.memory_space<vmem>>, vector<8x256xf32>,
    } else {
    }
    %c0 = arith.constant 0 : index
    %c0_4 = arith.constant 0 : index
    %8 = vector.load %arg7[%c0, %c0_4] : memref<128x256xf32, #tpu.memory_space<vmem>>, vector<128x256xf32>
    %c0_5 = arith.constant 0 : index
    %c0_6 = arith.constant 0 : index
    %9 = vector.load %arg3[%c0_5, %c0_6] : memref<128x128xf32, #tpu.memory_space<vmem>>, vector<128x128xf32>
    %c0_7 = arith.constant 0 : index
    %c0_8 = arith.constant 0 : index
    %10 = vector.load %arg4[%c0_7, %c0_8] : memref<128x256xf32, #tpu.memory_space<vmem>>, vector<128x256xf32>
    %cst = arith.constant dense<0.000000e+00> : vector<128x256xf32>
    %11 = tpu.matmul %9, %10, %cst {dimension_numbers = #tpu.dot_dimension_numbers<[1], [0], [0], [1], [0, 0, 1, 1], [], []>} : vector<128x128xf32>, vector<128x256xf32>, vector<128x256xf32> -> vector<128x256xf32>
    %12 = arith.addf %8, %11 : vector<128x256xf32>
    %c0_9 = arith.constant 0 : index
    %c0_10 = arith.constant 0 : index
    %13 = vector.load %arg7[%c0_9, %c0_10] : memref<128x256xf32, #tpu.memory_space<vmem>>, vector<128x256xf32>
    tpu.vector_store %arg7[%c0_9, %c0_10], %12 {strides = array<i32>} : memref<128x256xf32, #tpu.memory_space<vmem>>, vector<128x256xf32>,
    %c1_i32 = arith.constant 1 : i32
    %14 = arith.cmpi eq, %arg2, %c1_i32 : i32
    %15 = arith.extui %14 : i1 to i32
    %c0_i32_11 = arith.constant 0 : i32
    %16 = arith.cmpi ne, %15, %c0_i32_11 : i32
    scf.if %16 {
      %c0_12 = arith.constant 0 : index
      %c0_13 = arith.constant 0 : index
      %17 = vector.load %arg7[%c0_12, %c0_13] : memref<128x256xf32, #tpu.memory_space<vmem>>, vector<128x256xf32>
      %c0_14 = arith.constant 0 : index
      %c0_15 = arith.constant 0 : index
      %18 = vector.load %arg5[%c0_14, %c0_15] : memref<128x256xf32, #tpu.memory_space<vmem>>, vector<128x256xf32>
      tpu.vector_store %arg5[%c0_14, %c0_15], %17 {strides = array<i32>} : memref<128x256xf32, #tpu.memory_space<vmem>>, vector<128x256xf32>,
      %c0_16 = arith.constant 0 : index
      %c0_17 = arith.constant 0 : index
      %19 = vector.load %arg6[%c0_16, %c0_17] : memref<8x256xf32, #tpu.memory_space<vmem>>, vector<1x256xf32>
      %cst_18 = arith.constant dense<0.000000e+00> : vector<256xf32>
      %20 = vector.multi_reduction <add>, %17, %cst_18 [0] : vector<128x256xf32> to vector<256xf32>
      %21 = vector.shape_cast %20 : vector<256xf32> to vector<1x256xf32>
      %22 = arith.addf %19, %21 : vector<1x256xf32>
      %c0_19 = arith.constant 0 : index
      %c0_20 = arith.constant 0 : index
      %23 = vector.load %arg6[%c0_19, %c0_20] : memref<8x256xf32, #tpu.memory_space<vmem>>, vector<1x256xf32>
      tpu.vector_store %arg6[%c0_19, %c0_20], %22 {strides = array<i32>} : memref<8x256xf32, #tpu.memory_space<vmem>>, vector<1x256xf32>,
      %c1 = arith.constant 1 : index
      %c0_21 = arith.constant 0 : index
      %24 = vector.load %arg6[%c1, %c0_21] : memref<8x256xf32, #tpu.memory_space<vmem>>, vector<1x256xf32>
      %25 = arith.mulf %17, %17 : vector<128x256xf32>
      %cst_22 = arith.constant dense<0.000000e+00> : vector<256xf32>
      %26 = vector.multi_reduction <add>, %25, %cst_22 [0] : vector<128x256xf32> to vector<256xf32>
      %27 = vector.shape_cast %26 : vector<256xf32> to vector<1x256xf32>
      %28 = arith.addf %24, %27 : vector<1x256xf32>
      %c1_23 = arith.constant 1 : index
      %c0_24 = arith.constant 0 : index
      %29 = vector.load %arg6[%c1_23, %c0_24] : memref<8x256xf32, #tpu.memory_space<vmem>>, vector<1x256xf32>
      tpu.vector_store %arg6[%c1_23, %c0_24], %28 {strides = array<i32>} : memref<8x256xf32, #tpu.memory_space<vmem>>, vector<1x256xf32>,
    } else {
    }
    return
  }
  func.func @transform_0(%arg0: i32, %arg1: i32, %arg2: i32) -> (i32, i32) {
    %c0_i32 = arith.constant 0 : i32
    return %arg1, %arg2 : i32, i32
  }
  func.func @transform_1(%arg0: i32, %arg1: i32, %arg2: i32) -> (i32, i32) {
    %c0_i32 = arith.constant 0 : i32
    return %arg2, %arg0 : i32, i32
  }
  func.func @transform_2(%arg0: i32, %arg1: i32, %arg2: i32) -> (i32, i32) {
    %c0_i32 = arith.constant 0 : i32
    return %arg1, %arg0 : i32, i32
  }
  func.func @transform_3(%arg0: i32, %arg1: i32, %arg2: i32) -> (i32, i32) {
    %c0_i32 = arith.constant 0 : i32
    %c0_i32_0 = arith.constant 0 : i32
    return %c0_i32, %arg0 : i32, i32
  }
}

</mosaic_0001>

<bundles_post_ra>
// kernel: tpu_custom_call.1
= control target key start
LH: loop header
LB: loop body
LE: loop exit
PB: predicated region body
PF: predicated region fallthrough
CT: control target
= control target key end

     0   :  { %s2157_s0 = inlined_call_operand.hbm [shape: f32[256,256], index: 0, kind: input, shape index: {}]   ;;  %s2158_s1 = inlined_call_operand.hbm [shape: f32[256,512], index: 1, kind: input, shape index: {}]   ;;  %s2159_s2 = inlined_call_operand.hbm [shape: f32[256,512], index: 2, kind: output, shape index: {0}]   ;;  %s2160_s3 = inlined_call_operand.hbm [shape: f32[8,512], index: 3, kind: output, shape index: {1}]  }
   0x1   :  { %2190 = sst [smem:[#allocation36_spill]] %s2157_s0 }
   0x2   :  { %2191 = sst [smem:[#allocation37_spill]] %s2158_s1 }
   0x3   :  { %2192 = sst [smem:[#allocation38_spill]] %s2159_s2 }
   0x4   :  { %2193 = sst [smem:[#allocation39_spill]] %s2160_s3 }
   0x5   :  { %9 = vsyncpa [#allocation4], 0 }
   0x6   :  { %11 = vsyncpa [#allocation4 + $0x1], 0 }
   0x7   :  { %12 = vsyncpa [#allocation7], 0 }
   0x8   :  { %14 = vsyncpa [#allocation7 + $0x1], 0 }
   0x9   :  { %15 = vsyncpa [#allocation5], 0 }
   0xa   :  { %17 = vsyncpa [#allocation5 + $0x1], 0 }
   0xb   :  { %18 = vsyncpa [#allocation10], 0 }
   0xc   :  { %20 = vsyncpa [#allocation10 + $0x1], 0  ;;  %s1614_s12 = smov 0   ;;  %s1616_s13 = smov 0  }
   0xd   :  { %s1618_s14 = smov 0   ;;  %s1620_s15 = smov 0  }
   0xe   :  { %s1622_s16 = smov 0   ;;  %s1624_s17 = smov 0  }
   0xf   :  { %s1626_s18 = smov 0   ;;  %s1628_s19 = smov 0  }
  0x10   :  { %s1630_s20 = smov 0   ;;  %s1632_s21 = smov 0  }
  0x11   :  { %s1634_s22 = smov 0   ;;  %s1636_s23 = smov 0  }
  0x12   :  { %s1638_s24 = smov 0   ;;  %s1640_s25 = smov 0  }
  0x13   :  { %s1642_s26 = smov 0   ;;  %s1644_s27 = smov 0  }
  0x14   :  { %s1646_s28 = smov 0   ;;  %s1648_s29 = smov 0  }
  0x15   :  { %s1650_s30 = smov 0  }
  0x16 LB: > { %2194 = sst [smem:[#allocation15_spill]] %s1504_s12  ;;  %s1046_s4 = sadd.s32 4294967295, %s1576_s30   ;;  %s1576_s30 = sphi %s1650_s30, %s26_s30   ;;  %s1572_s29 = sphi %s1648_s29, %s2274_s29   ;;  %s1568_s28 = sphi %s1646_s28, %s2273_s28   ;;  %s1564_s27 = sphi %s1644_s27, %s2272_s27   ;;  %s1560_s26 = sphi %s1642_s26, %s2271_s26   ;;  %s1556_s25 = sphi %s1640_s25, %s2270_s25   ;;  %s1552_s24 = sphi %s1638_s24, %s2269_s24   ;;  %s1548_s23 = sphi %s1636_s23, %s2268_s23   ;;  %s1544_s22 = sphi %s1634_s22, %s2267_s22   ;;  %s1540_s21 = sphi %s1632_s21, %s2266_s21   ;;  %s1536_s20 = sphi %s1630_s20, %s2265_s20   ;;  %s1532_s19 = sphi %s1628_s19, %s2264_s19   ;;  %s1528_s18 = sphi %s1626_s18, %s2263_s18   ;;  %s1524_s17 = sphi %s1624_s17, %s2278_s17   ;;  %s1520_s16 = sphi %s1622_s16, %s2277_s16   ;;  %s1516_s15 = sphi %s1620_s15, %s2276_s15   ;;  %s1512_s14 = sphi %s1618_s14, %s2275_s14   ;;  %s1508_s13 = sphi %s1616_s13, %s2261_s13   ;;  %s1504_s12 = sphi %s1614_s12, %s2260_s12  }
  0x17   : > { %2195 = sst [smem:[#allocation16_spill]] %s1508_s13  ;;  %s38_s5 = sadd.s32 1, %s1564_s27 }
  0x18   : > { %2196 = sst [smem:[#allocation17_spill]] %s1512_s14  ;;  %p39_p0 = scmp.ge.s32.totalorder %s38_s5, 2 }
  0x19   : > { %2197 = sst [smem:[#allocation18_spill]] %s1532_s19  ;;  %s41_s6 = sadd.s32 1, %s1568_s28 }
  0x1a   : > { %2198 = sst [smem:[#allocation19_spill]] %s1536_s20  ;;  %s54_s7 = sadd.s32 1, %s1548_s23 }
  0x1b   : > { %2199 = sst [smem:[#allocation20_spill]] %s1544_s22  ;;  %p61_p1 = scmp.ne.s32.totalorder %s1548_s23, %s1544_s22 }
  0x1c   : > { %2200 = sst [smem:[#allocation21_spill]] %s1548_s23  ;;  %s2280_s5 = smov (%p39_p0, %s38_s5), 0 }
  0x1d   : > { %2201 = sst [smem:[#allocation22_spill]] %s1552_s24  ;;  %s2282_s6 = smov (!%p39_p0, %s41_s6), %s1568_s28 }
  0x1e   : > { %2202 = sst [smem:[#allocation23_spill]] %s1556_s25  ;;  %s1720_s8 = ssub.s32 %s1564_s27, %s2280_s5 }
  0x1f   : > { %2203 = sst [smem:[#allocation24_spill]] %s1560_s26  ;;  %p2175_p2 = scmp.eq.s32.totalorder %s1576_s30, 0 }
  0x20   : > { %2204 = sst [smem:[#allocation25_spill]] %s1564_s27  ;;  %p2176_p3 = scmp.ge.s32.totalorder %s2282_s6, 2 }
  0x21   : > { %2205 = sst [smem:[#allocation26_spill]] %s1568_s28  ;;  %p67_p4 = scmp.ne.s32.totalorder %s1544_s22, %s1540_s21 }
  0x22   : > { %2206 = sst [smem:[#allocation27_spill]] %s1572_s29  ;;  %p1727_p5 = por %p2175_p2, %p61_p1 }
  0x23   : > { %2207 = sst [smem:[#allocation28_spill]] %s2280_s5  ;;  %p1731_p6 = scmp.eq.s32.totalorder %s1046_s4, 0 }
  0x24   : > { %s1738_s11 = scalar_select %p2176_p3, 0, %s2282_s6  }
  0x25   : > { %p1742_p7 = por %p1731_p6, %p67_p4  ;;  %p1746_p8 = scmp.eq.s32.totalorder %s1046_s4, 7 }
  0x26   : > { %2210 = sst [smem:[#allocation29_spill]] %s1738_s11  ;;  %s1752_s3 = ssub.s32 %s1568_s28, %s1738_s11 }
  0x27   : > { %s2211_s5 = scalar_select %p1742_p7, 1, 0 }
  0x28   : > { %s2213_s21 = scalar_select %p1746_p8, 1, 0 }
  0x29   : > { %2212 = sst [smem:[#allocation30_spill]] %s2211_s5  ;;  %s51_s2 = sor.u32 %s1720_s8, %s1752_s3 }
  0x2a   : > { %2214 = sst [smem:[#allocation31_spill]] %s2213_s21  ;;  %p2178_p9 = scmp.lt.s32.totalorder %s1576_s30, 8 }
  0x2b   : > { %p52_p10 = scmp.eq.s32.totalorder %s51_s2, 0  ;;  %s173_s26 = sand.u32 1, %s1548_s23  }
  0x2c   : > { %s1050_s25 = sshll.u32 %s173_s26, 7  ;;  %s1078_s22 = sshll.u32 %s1568_s28, 5 }
  0x2d   : > { %s1759_s24 = scalar_select %p52_p10, %s1548_s23, %s54_s7  }
  0x2e   : > { %s183_s1 = sadd.s32 %s1564_s27, %s1078_s22  ;;  %s177_s12 = scalar_lea.vmem [#allocation3], %s1050_s25 }
  0x2f   : > { %2215 = sst [smem:[#allocation32_spill]] %s1759_s24  ;;  %s186_s5 = sshll.u32 %s177_s12, 4  ;;  %s187_s5 = int_to_ptr.vmem [resolvable:$true] %s186_s5 }
  0x30   : > { %s1053_s13 = sshll.u32 %s183_s1, 7  ;;  %s2216_s0 = sld [smem:[#allocation36_spill]] }
  0x31   : > { %p1770_p11 = pnand %p2178_p9, %p1727_p5  ;;  %s174_s2 = scalar_lea.sflag [#allocation4], %s173_s26 }
  0x32   : > { %s1315_s7 = scalar_lea.vmem %s187_s5, 2048  ;;  %s1578_s1 = smov [#allocation3]  }
  0x33   : > { %p1304_p12 = pneg %p1770_p11  ;;  %p1316_p13 = scmp.ne.s32.totalorder %s187_s5, %s1315_s7 }
  0x34   : > { %s1320_s12 = sshll.u32 %s1578_s1, 4  ;;  %s1321_s12 = int_to_ptr.vmem [resolvable:$false] %s1320_s12 }
  0x35   : > { %p1318_p0 = pnand %p1316_p13, %p1304_p12  ;;  %s1322_s22 = scalar_lea.vmem %s1321_s12, 4096 }
  0x36   : > { %s185_s21 = scalar_lea.hbm %s2216_s0, %s1053_s13  ;;  %p1323_p4 = scmp.lt.s32.totalorder %s187_s5, %s1321_s12 }
  0x37   : > { %p1319_p1 = pneg %p1318_p0  ;;  %p1324_p10 = scmp.lt.s32.totalorder %s1322_s22, %s1315_s7 }
  0x39   : > { %p1325_p2 = por %p1324_p10, %p1323_p4 }
  0x3b   : > { %p1326_p3 = pnand %p1325_p2, %p1319_p1 }
  0x3d   : > { %1329 = shalt.err (!%p1326_p3)
}
  0x3e   : > { %s2177_s13 = smov 256   ;;  %s1580_s14 = smov 128  }
  0x3f   : > { %s1581_s25 = smov 8   ;;  %p1059_p2 = scmp.ge.s32.totalorder %s1576_s30, 1 }
  0x40   : > { %1125 = dma.hbm_to_vmem [thread:$0]  (!%p1770_p11), %s185_s21, 2048, %s187_s5, %s174_s2, %s2177_s13, %s1580_s14, %s1581_s25  }
  0x41   : > { %p218_p3 = scmp.lt.s32.totalorder %s1576_s30, 9  ;;  %s1047_s9 = sadd.s32 4294967294, %s1576_s30  }
  0x42   : > { %s45_s4 = sadd.s32 1, %s1572_s29  ;;  %s82_s7 = sadd.s32 1, %s1536_s20 }
  0x43   : > { %p1781_p5 = pnand %p1059_p2, %p218_p3  ;;  %p2219_p12 = scmp.ge.s32.totalorder %s2282_s6, 2 }
  0x44   : > { %p89_p13 = scmp.ne.s32.totalorder %s1536_s20, %s1532_s19  ;;  %p95_p0 = scmp.ne.s32.totalorder %s1532_s19, %s1528_s18 }
  0x45   : > { %s2284_s4 = smov (!%p2219_p12, %s45_s4), %s1572_s29  ;;  %s110_s5 = sadd.s32 1, %s1524_s17 }
  0x46   : > { %p47_p11 = scmp.ge.s32.totalorder %s2284_s4, 2  ;;  %p2221_p1 = scmp.eq.s32.totalorder %s1576_s30, 0 }
  0x47   : > { %s2223_s2 = sld [smem:[#allocation17_spill]]  ;;  %p1804_p10 = por %p95_p0, %p1731_p6 }
  0x48   : > { %p1798_p4 = por %p89_p13, %p2221_p1  ;;  %s2225_s6 = sld [smem:[#allocation16_spill]] }
  0x49   : > { %s2224_s1 = scalar_select %p1804_p10, 1, 0 }
  0x4a   : > { %s2286_s4 = smov (%p47_p11, %s2284_s4), 0  ;;  %s2227_s18 = sld [smem:[#allocation15_spill]] }
  0x4b   : > { %2226 = sst [smem:[#allocation33_spill]] %s2286_s4  ;;  %p120_p2 = scmp.ne.s32.totalorder %s1524_s17, %s1520_s16 }
  0x4c   : > { %p126_p3 = scmp.ne.s32.totalorder %s1520_s16, %s1516_s15  ;;  %s78_s12 = ssub.s32 %s1572_s29, %s2286_s4 }
  0x4d   : > { %p1816_p12 = scmp.eq.s32.totalorder %s1047_s9, 7  ;;  %s79_s10 = sor.u32 %s78_s12, %s1720_s8 }
  0x4e   : > { %s107_s14 = sor.u32 %s78_s12, %s1752_s3  ;;  %p80_p6 = scmp.eq.s32.totalorder %s79_s10, 0 }
  0x4f   : > { %p108_p13 = scmp.eq.s32.totalorder %s107_s14, 0  ;;  %p1824_p0 = por %p1746_p8, %p120_p2 }
  0x50   : > { %p1830_p11 = por %p1816_p12, %p126_p3  ;;  %p134_p1 = scmp.eq.s32.totalorder %s78_s12, 0 }
  0x51   : > { %s1835_s13 = scalar_select %p80_p6, %s1536_s20, %s82_s7  }
  0x52   : > { %s2230_s9 = scalar_select %p1830_p11, 1, 0 }
  0x53   : > { %2231 = sst [smem:[#allocation34_spill]] %s1835_s13  ;;  %s136_s8 = sadd.s32 1, %s2223_s2 }
  0x54   : > { %s1838_s0 = scalar_select %p108_p13, %s1524_s17, %s110_s5  }
  0x55   : > { %p146_p9 = scmp.ne.s32.totalorder %s2223_s2, %s2225_s6  ;;  %p152_p10 = scmp.ne.s32.totalorder %s2225_s6, %s2227_s18 }
  0x56   : > { %2232 = sst [smem:[#allocation35_spill]] %s1838_s0  ;;  %s2288_s2 = smov (!%p134_p1, %s2223_s2), %s136_s8 }
  0x57   : > { %p1850_p2 = por %p146_p9, %p1746_p8  ;;  %p1856_p3 = por %p152_p10, %p1816_p12 }
  0x58   : > { %s196_s7 = sand.u32 1, %s1536_s20   ;;  %s1056_s5 = sshll.u32 %s1572_s29, 1 }
  0x59   : > { %s2233_s3 = scalar_select %p1850_p2, 1, 0 }
  0x5a   : > { %s2234_s10 = scalar_select %p1856_p3, 1, 0 }
  0x5b   : > { %s1054_s12 = sshll.u32 %s196_s7, 8  ;;  %s1079_s14 = sshll.u32 %s1564_s27, 6 }
  0x5c   : > { %s207_s4 = sadd.s32 %s1079_s14, %s1056_s5  ;;  %s200_s28 = scalar_lea.vmem [#allocation6], %s1054_s12 }
  0x5d   : > { %s210_s24 = sshll.u32 %s200_s28, 4  ;;  %s1058_s6 = sshll.u32 %s207_s4, 7  ;;  %s211_s24 = int_to_ptr.vmem [resolvable:$true] %s210_s24 }
  0x5e   : > { %s2235_s8 = sld [smem:[#allocation37_spill]]  ;;  %p2236_p8 = scmp.lt.s32.totalorder %s1576_s30, 8 }
  0x5f   : > { %s197_s13 = scalar_lea.sflag [#allocation7], %s196_s7  ;;  %s1343_s29 = scalar_lea.vmem %s211_s24, 4096 }
  0x60   : > { %p1870_p9 = pnand %p2236_p8, %p1798_p4  ;;  %p1344_p12 = scmp.ne.s32.totalorder %s211_s24, %s1343_s29 }
  0x61   : > { %s1582_s28 = smov [#allocation6]  }
  0x62   : > { %p1332_p10 = pneg %p1870_p9  ;;  %s1348_s4 = sshll.u32 %s1582_s28, 4  ;;  %s1349_s4 = int_to_ptr.vmem [resolvable:$false] %s1348_s4 }
  0x63   : > { %s1350_s5 = scalar_lea.vmem %s1349_s4, 8192  ;;  %p1351_p1 = scmp.lt.s32.totalorder %s211_s24, %s1349_s4 }
  0x64   : > { %s209_s23 = scalar_lea.hbm %s2235_s8, %s1058_s6  ;;  %p1346_p6 = pnand %p1344_p12, %p1332_p10 }
  0x65   : > { %p1352_p3 = scmp.lt.s32.totalorder %s1350_s5, %s1343_s29 }
  0x66   : > { %p1347_p13 = pneg %p1346_p6 }
  0x67   : > { %p1353_p11 = por %p1352_p3, %p1351_p1 }
  0x69   : > { %p1354_p2 = pnand %p1353_p11, %p1347_p13 }
  0x6b   : > { %1357 = shalt.err (!%p1354_p2)
}
  0x6c   : > { %s1583_s21 = smov 512   ;;  %s1584_s12 = smov 16  }
  0x6d   : > { %s2238_s7 = smov 256   ;;  %222 = sbr.rel (%p1781_p5) target bundleno = 546 (0x222), region = 28 }
  0x6e   : > { %1128 = dma.hbm_to_vmem [thread:$0]  (!%p1870_p9), %s209_s23, 4096, %s211_s24, %s197_s13, %s1583_s21, %s2238_s7, %s1584_s12  }
  0x6f   : > { %s2239_s14 = sld [smem:[#allocation20_spill]] (!%p1781_p5) }
  0x75   : > { %s224_s18 = sand.u32 1, %s2239_s14  }
  0x76   : > { %s1060_s11 = sshll.u32 %s224_s18, 7  ;;  %s225_s8 = scalar_lea.sflag [#allocation4], %s224_s18 }
  0x77   : > { %s1882_s28 = scalar_lea.vmem [#allocation3], %s1060_s11 }
  0x78   : > { %1487 = dma.done.wait (%p1742_p7), %s225_s8, 2048  }
  0x79   : > { %1489 = vsyncadd (%p1742_p7), %s225_s8, 4294965248  ;;  %s233_s29 = sand.u32 1, %s1532_s19   ;;  %p2241_p5 = scmp.ne.s32.totalorder %s2224_s1, 0 }
  0x7a   : > { %s1061_s22 = sshll.u32 %s233_s29, 8  ;;  %s234_s23 = scalar_lea.sflag [#allocation7], %s233_s29 }
  0x7b   : > { %s1889_s24 = scalar_lea.vmem [#allocation6], %s1061_s22 }
  0x7c   : > { %1491 = dma.done.wait (%p2241_p5), %s234_s23, 4096  }
  0x7d   : > { %1493 = vsyncadd (%p2241_p5), %s234_s23, 4294963200  ;;  %s2242_s13 = sld [smem:[#allocation16_spill]]  ;;  %s260_s4 = sand.u32 1, %s1520_s16  }
  0x7e   : > { %s2243_s26 = sld [smem:[#allocation22_spill]]  ;;  %s1062_s21 = sshll.u32 %s260_s4, 8 }
  0x7f   : > { %s1902_s7 = scalar_lea.vmem [#allocation8], %s1062_s21 }
  0x83   : > { %s2185_s5 = sand.u32 1, %s2242_s13  }
  0x84   : > { %s1063_s12 = sshll.u32 %s2185_s5, 4  ;;  %p276_p7 = scmp.eq.s32.totalorder %s2243_s26, 0 }
  0x85   : > { %s1904_s14 = scalar_lea.vmem [#allocation9], %s1063_s12  ;;  %p1064_p4 = scmp.ne.s32.totalorder %s2243_s26, 0 }
  0x87   : > { %279 = sbr.rel (%p1064_p4) target bundleno = 157 (0x9d), region = 40 }
  0x8c   : > { %v1585_v0 = vmov 0.0  }
  0x8d   : > { %280 = vst [vmem:[#allocation2 + $0xb0] sm:$0xff] %v1585_v0  ;;  %281 = vst [vmem:[#allocation2] sm:$0xff] %v1585_v0 }
  0x8e   : > { %282 = vst [vmem:[#allocation2 + $0xd8] sm:$0xff] %v1585_v0  ;;  %283 = vst [vmem:[#allocation2 + $0x18] sm:$0xff] %v1585_v0 }
  0x8f   : > { %284 = vst [vmem:[#allocation2 + $0x50] sm:$0xff] %v1585_v0  ;;  %285 = vst [vmem:[#allocation2 + $0x68] sm:$0xff] %v1585_v0 }
  0x90   : > { %286 = vst [vmem:[#allocation2 + $0x30] sm:$0xff] %v1585_v0  ;;  %287 = vst [vmem:[#allocation2 + $0x48] sm:$0xff] %v1585_v0 }
  0x91   : > { %288 = vst [vmem:[#allocation2 + $0x80] sm:$0xff] %v1585_v0  ;;  %289 = vst [vmem:[#allocation2 + $0x88] sm:$0xff] %v1585_v0 }
  0x92   : > { %290 = vst [vmem:[#allocation2 + $0xe8] sm:$0xff] %v1585_v0  ;;  %291 = vst [vmem:[#allocation2 + $0xb8] sm:$0xff] %v1585_v0 }
  0x93   : > { %292 = vst [vmem:[#allocation2 + $0x60] sm:$0xff] %v1585_v0  ;;  %293 = vst [vmem:[#allocation2 + $0xf0] sm:$0xff] %v1585_v0 }
  0x94   : > { %294 = vst [vmem:[#allocation2 + $0x8] sm:$0xff] %v1585_v0  ;;  %295 = vst [vmem:[#allocation2 + $0x78] sm:$0xff] %v1585_v0 }
  0x95   : > { %296 = vst [vmem:[#allocation2 + $0x38] sm:$0xff] %v1585_v0  ;;  %297 = vst [vmem:[#allocation2 + $0x58] sm:$0xff] %v1585_v0 }
  0x96   : > { %298 = vst [vmem:[#allocation2 + $0x40] sm:$0xff] %v1585_v0  ;;  %299 = vst [vmem:[#allocation2 + $0xc8] sm:$0xff] %v1585_v0 }
  0x97   : > { %300 = vst [vmem:[#allocation2 + $0xe0] sm:$0xff] %v1585_v0  ;;  %301 = vst [vmem:[#allocation2 + $0x90] sm:$0xff] %v1585_v0 }
  0x98   : > { %302 = vst [vmem:[#allocation2 + $0x70] sm:$0xff] %v1585_v0  ;;  %303 = vst [vmem:[#allocation2 + $0xc0] sm:$0xff] %v1585_v0 }
  0x99   : > { %304 = vst [vmem:[#allocation2 + $0xa8] sm:$0xff] %v1585_v0  ;;  %305 = vst [vmem:[#allocation2 + $0xd0] sm:$0xff] %v1585_v0 }
  0x9a   : > { %306 = vst [vmem:[#allocation2 + $0x10] sm:$0xff] %v1585_v0  ;;  %307 = vst [vmem:[#allocation2 + $0x28] sm:$0xff] %v1585_v0 }
  0x9b   : > { %308 = vst [vmem:[#allocation2 + $0xa0] sm:$0xff] %v1585_v0  ;;  %309 = vst [vmem:[#allocation2 + $0xf8] sm:$0xff] %v1585_v0 }
  0x9c   : > { %310 = vst [vmem:[#allocation2 + $0x20] sm:$0xff] %v1585_v0  ;;  %311 = vst [vmem:[#allocation2 + $0x98] sm:$0xff] %v1585_v0 }
  0x9d PF: > { %s2244_s1 = sld [smem:[#allocation23_spill]] }
  0xa3   : > { %p312_p11 = scmp.eq.s32.totalorder %s2244_s1, 0 }
  0xa5   : > { %p313_p2 = pnand %p312_p11, %p276_p7 }
  0xa7   : > { %316 = sbr.rel (%p313_p2) target bundleno = 174 (0xae), region = 44 }
  0xac   : > { %v1586_v1 = vmov 0.0  }
  0xad   : > { %317 = vst [vmem:[%s1904_s14] sm:$0xff] %v1586_v1  ;;  %318 = vst [vmem:[%s1904_s14 + $0x8] sm:$0xff] %v1586_v1 }
  0xae PF: > { %v398_v2 = vld [vmem:[%s1889_s24 + $0xf8] sm:$0xff]  ;;  %v397_v3 = vld [vmem:[%s1889_s24 + $0xf0] sm:$0xff]  ;;  %v396_v4 = vld [vmem:[%s1889_s24 + $0xe8] sm:$0xff]  ;;  %v1587_v36 = vmov 0.0   ;;  %s2246_s18 = sld [smem:[#allocation22_spill]] }
  0xaf   : > { %399 = vmatprep.subr.mxu0 %v398_v2  ;;  %1082 = vmatprep.subr.mxu1 %v398_v2  ;;  %v395_v5 = vld [vmem:[%s1889_s24 + $0xe0] sm:$0xff]  ;;  %v394_v6 = vld [vmem:[%s1889_s24 + $0xd8] sm:$0xff]  ;;  %v393_v7 = vld [vmem:[%s1889_s24 + $0xd0] sm:$0xff] }
  0xb0   : > { %400 = vmatpush1.msra.mxu0 %v397_v3  ;;  %1098 = vmatpush1.msra.mxu1 %v397_v3  ;;  %v392_v8 = vld [vmem:[%s1889_s24 + $0xc8] sm:$0xff]  ;;  %v391_v9 = vld [vmem:[%s1889_s24 + $0xc0] sm:$0xff]  ;;  %v390_v10 = vld [vmem:[%s1889_s24 + $0xb8] sm:$0xff] }
  0xb1   : > { %401 = vmatprep.subr.mxu0 %v396_v4  ;;  %1083 = vmatprep.subr.mxu1 %v396_v4  ;;  %v389_v11 = vld [vmem:[%s1889_s24 + $0xb0] sm:$0xff]  ;;  %v388_v12 = vld [vmem:[%s1889_s24 + $0xa8] sm:$0xff]  ;;  %v387_v13 = vld [vmem:[%s1889_s24 + $0xa0] sm:$0xff] }
  0xb2   : > { %402 = vmatpush1.msra.mxu0 %v395_v5  ;;  %1099 = vmatpush1.msra.mxu1 %v395_v5  ;;  %v386_v14 = vld [vmem:[%s1889_s24 + $0x98] sm:$0xff]  ;;  %v385_v15 = vld [vmem:[%s1889_s24 + $0x90] sm:$0xff]  ;;  %v384_v16 = vld [vmem:[%s1889_s24 + $0x88] sm:$0xff] }
  0xb3   : > { %403 = vmatprep.subr.mxu0 %v394_v6  ;;  %1084 = vmatprep.subr.mxu1 %v394_v6  ;;  %v383_v17 = vld [vmem:[%s1889_s24 + $0x80] sm:$0xff]  ;;  %v382_v18 = vld [vmem:[%s1889_s24 + $0x78] sm:$0xff]  ;;  %v381_v19 = vld [vmem:[%s1889_s24 + $0x70] sm:$0xff] }
  0xb4   : > { %404 = vmatpush1.msra.mxu0 %v393_v7  ;;  %1100 = vmatpush1.msra.mxu1 %v393_v7  ;;  %v380_v20 = vld [vmem:[%s1889_s24 + $0x68] sm:$0xff]  ;;  %v379_v21 = vld [vmem:[%s1889_s24 + $0x60] sm:$0xff]  ;;  %v378_v22 = vld [vmem:[%s1889_s24 + $0x58] sm:$0xff]  ;;  %p1065_p3 = scmp.ne.s32.totalorder %s2246_s18, 1 }
  0xb5   : > { %405 = vmatprep.subr.mxu0 %v392_v8  ;;  %1085 = vmatprep.subr.mxu1 %v392_v8  ;;  %v377_v23 = vld [vmem:[%s1889_s24 + $0x50] sm:$0xff]  ;;  %v376_v24 = vld [vmem:[%s1889_s24 + $0x48] sm:$0xff]  ;;  %v375_v25 = vld [vmem:[%s1889_s24 + $0x40] sm:$0xff] }
  0xb6   : > { %406 = vmatpush1.msra.mxu0 %v391_v9  ;;  %1101 = vmatpush1.msra.mxu1 %v391_v9  ;;  %v374_v26 = vld [vmem:[%s1889_s24 + $0x38] sm:$0xff]  ;;  %v373_v27 = vld [vmem:[%s1889_s24 + $0x30] sm:$0xff]  ;;  %v372_v28 = vld [vmem:[%s1889_s24 + $0x28] sm:$0xff] }
  0xb7   : > { %407 = vmatprep.subr.mxu0 %v390_v10  ;;  %1086 = vmatprep.subr.mxu1 %v390_v10  ;;  %v371_v29 = vld [vmem:[%s1889_s24 + $0x20] sm:$0xff]  ;;  %v370_v30 = vld [vmem:[%s1889_s24 + $0x18] sm:$0xff]  ;;  %v369_v31 = vld [vmem:[%s1889_s24 + $0x10] sm:$0xff] }
  0xb8   : > { %408 = vmatpush1.msra.mxu0 %v389_v11  ;;  %1102 = vmatpush1.msra.mxu1 %v389_v11  ;;  %v368_v32 = vld [vmem:[%s1889_s24 + $0x8] sm:$0xff]  ;;  %v367_v33 = vld [vmem:[%s1889_s24] sm:$0xff]  ;;  %v353_v39 = vld [vmem:[%s1882_s28 + $0x10] sm:$0xff] }
  0xb9   : > { %409 = vmatprep.subr.mxu0 %v388_v12  ;;  %1087 = vmatprep.subr.mxu1 %v388_v12  ;;  %v351_v34 = vld [vmem:[%s1882_s28] sm:$0xff]  ;;  %v352_v37 = vld [vmem:[%s1882_s28 + $0x8] sm:$0xff]  ;;  %v361_v40 = vld [vmem:[%s1882_s28 + $0x50] sm:$0xff] }
  0xba   : > { %410 = vmatpush1.msra.mxu0 %v387_v13  ;;  %1103 = vmatpush1.msra.mxu1 %v387_v13  ;;  %v359_v35 = vld [vmem:[%s1882_s28 + $0x40] sm:$0xff]  ;;  %v360_v38 = vld [vmem:[%s1882_s28 + $0x48] sm:$0xff]  ;;  %v354_v41 = vld [vmem:[%s1882_s28 + $0x18] sm:$0xff] }
  0xbb   : > { %411 = vmatprep.subr.mxu0 %v386_v14  ;;  %1088 = vmatprep.subr.mxu1 %v386_v14  ;;  %v362_v42 = vld [vmem:[%s1882_s28 + $0x58] sm:$0xff]  ;;  %v355_v43 = vld [vmem:[%s1882_s28 + $0x20] sm:$0xff]  ;;  %v356_v45 = vld [vmem:[%s1882_s28 + $0x28] sm:$0xff] }
  0xbc   : > { %412 = vmatpush1.msra.mxu0 %v385_v15  ;;  %1104 = vmatpush1.msra.mxu1 %v385_v15  ;;  %v363_v44 = vld [vmem:[%s1882_s28 + $0x60] sm:$0xff]  ;;  %v364_v46 = vld [vmem:[%s1882_s28 + $0x68] sm:$0xff]  ;;  %v357_v47 = vld [vmem:[%s1882_s28 + $0x30] sm:$0xff] }
  0xbd   : > { %413 = vmatprep.subr.mxu0 %v384_v16  ;;  %1089 = vmatprep.subr.mxu1 %v384_v16  ;;  %v365_v48 = vld [vmem:[%s1882_s28 + $0x70] sm:$0xff]  ;;  %v358_v49 = vld [vmem:[%s1882_s28 + $0x38] sm:$0xff]  ;;  %v320_v55 = vld [vmem:[#allocation2] sm:$0xff] }
  0xbe   : > { %414 = vmatpush1.msra.mxu0 %v383_v17  ;;  %1105 = vmatpush1.msra.mxu1 %v383_v17  ;;  %v366_v50 = vld [vmem:[%s1882_s28 + $0x78] sm:$0xff]  ;;  %v319_v51 = vld [vmem:[#allocation2 + $0xb0] sm:$0xff]  ;;  %v337_v62 = vld [vmem:[#allocation2 + $0x40] sm:$0xff] }
  0xbf   : > { %415 = vmatprep.subr.mxu0 %v382_v18  ;;  %1090 = vmatprep.subr.mxu1 %v382_v18  ;;  %v335_v52 = vld [vmem:[#allocation2 + $0x38] sm:$0xff]  ;;  %v338_v4 = vld [vmem:[#allocation2 + $0xc8] sm:$0xff]  ;;  %v323_v9 = vld [vmem:[#allocation2 + $0x50] sm:$0xff] }
  0xc0   : > { %416 = vmatpush1.msra.mxu0 %v381_v19  ;;  %1106 = vmatpush1.msra.mxu1 %v381_v19  ;;  %v336_v56 = vld [vmem:[#allocation2 + $0x58] sm:$0xff]  ;;  %v339_v10 = vld [vmem:[#allocation2 + $0xe0] sm:$0xff]  ;;  %v324_v15 = vld [vmem:[#allocation2 + $0x68] sm:$0xff] }
  0xc1   : > { %417 = vmatprep.subr.mxu0 %v380_v20  ;;  %1091 = vmatprep.subr.mxu1 %v380_v20  ;;  %v321_v61 = vld [vmem:[#allocation2 + $0xd8] sm:$0xff]  ;;  %v340_v16 = vld [vmem:[#allocation2 + $0x90] sm:$0xff] }
  0xc2   : > { %418 = vmatpush1.msra.mxu0 %v379_v21  ;;  %1107 = vmatpush1.msra.mxu1 %v379_v21  ;;  %v322_v3 = vld [vmem:[#allocation2 + $0x18] sm:$0xff]  ;;  %v325_v21 = vld [vmem:[#allocation2 + $0x30] sm:$0xff] }
  0xc3   : > { %419 = vmatprep.subr.mxu0 %v378_v22  ;;  %1092 = vmatprep.subr.mxu1 %v378_v22  ;;  %v341_v22 = vld [vmem:[#allocation2 + $0x70] sm:$0xff] }
  0xc4   : > { %420 = vmatpush1.msra.mxu0 %v377_v23  ;;  %1108 = vmatpush1.msra.mxu1 %v377_v23 }
  0xc5   : > { %421 = vmatprep.subr.mxu0 %v376_v24  ;;  %1093 = vmatprep.subr.mxu1 %v376_v24 }
  0xc6   : > { %422 = vmatpush1.msra.mxu0 %v375_v25  ;;  %1109 = vmatpush1.msra.mxu1 %v375_v25 }
  0xc7   : > { %423 = vmatprep.subr.mxu0 %v374_v26  ;;  %1094 = vmatprep.subr.mxu1 %v374_v26 }
  0xc8   : > { %424 = vmatpush1.msra.mxu0 %v373_v27  ;;  %1110 = vmatpush1.msra.mxu1 %v373_v27  ;;  %v326_v27 = vld [vmem:[#allocation2 + $0x48] sm:$0xff] }
  0xc9   : > { %425 = vmatprep.subr.mxu0 %v372_v28  ;;  %1095 = vmatprep.subr.mxu1 %v372_v28  ;;  %v342_v28 = vld [vmem:[#allocation2 + $0xc0] sm:$0xff] }
  0xca   : > { %426 = vmatpush1.msra.mxu0 %v371_v29  ;;  %1111 = vmatpush1.msra.mxu1 %v371_v29 }
  0xcb   : > { %427 = vmatprep.subr.mxu0 %v370_v30  ;;  %1096 = vmatprep.subr.mxu1 %v370_v30 }
  0xcc   : > { %428 = vmatpush1.msra.mxu0 %v369_v31  ;;  %1112 = vmatpush1.msra.mxu1 %v369_v31 }
  0xcd   : > { %429 = vmatprep.subr.mxu0 %v368_v32  ;;  %1097 = vmatprep.subr.mxu1 %v368_v32 }
  0xce   : > { %430 = vmatpush1.msra.mxu0 %v367_v33  ;;  %1113 = vmatpush1.msra.mxu1 %v367_v33  ;;  %v327_v33 = vld [vmem:[#allocation2 + $0x80] sm:$0xff] }
  0xcf   : > { %463 = vmatprep.mubr.f32.mxu0 %v1587_v36  ;;  %511 = vmatprep.mubr.f32.mxu1 %v1587_v36 }
  0xd0   : > { %464 = vmatmul.mubr.f32.vlgmr.msra.gmra.mxu0 %v351_v34  ;;  %512 = vmatmul.mubr.f32.vlgmr.msra.gmra.mxu1 %v359_v35  ;;  %v343_v34 = vld [vmem:[#allocation2 + $0xa8] sm:$0xff] }
  0xd1   : > { %469 = vmatprep.mubr.f32.mxu0 %v1587_v36  ;;  %517 = vmatprep.mubr.f32.mxu1 %v1587_v36 }
  0xd4   : > { %470 = vmatmul.mubr.f32.gmra.mxu0 %v352_v37  ;;  %518 = vmatmul.mubr.f32.gmra.mxu1 %v360_v38 }
  0xd5   : > { %475 = vmatprep.mubr.f32.mxu0 %v1587_v36  ;;  %523 = vmatprep.mubr.f32.mxu1 %v1587_v36 }
  0xd8   : > { %476 = vmatmul.mubr.f32.gmra.mxu0 %v353_v39  ;;  %524 = vmatmul.mubr.f32.gmra.mxu1 %v361_v40  ;;  %v328_v39 = vld [vmem:[#allocation2 + $0x88] sm:$0xff]  ;;  %v344_v40 = vld [vmem:[#allocation2 + $0xd0] sm:$0xff] }
  0xd9   : > { %481 = vmatprep.mubr.f32.mxu0 %v1587_v36  ;;  %529 = vmatprep.mubr.f32.mxu1 %v1587_v36 }
  0xdc   : > { %482 = vmatmul.mubr.f32.gmra.mxu0 %v354_v41  ;;  %530 = vmatmul.mubr.f32.gmra.mxu1 %v362_v42 }
  0xdd   : > { %487 = vmatprep.mubr.f32.mxu0 %v1587_v36  ;;  %535 = vmatprep.mubr.f32.mxu1 %v1587_v36 }
  0xe0   : > { %488 = vmatmul.mubr.f32.gmra.mxu0 %v355_v43  ;;  %536 = vmatmul.mubr.f32.gmra.mxu1 %v363_v44 }
  0xe1   : > { %493 = vmatprep.mubr.f32.mxu0 %v1587_v36  ;;  %541 = vmatprep.mubr.f32.mxu1 %v1587_v36 }
  0xe4   : > { %494 = vmatmul.mubr.f32.gmra.mxu0 %v356_v45  ;;  %542 = vmatmul.mubr.f32.gmra.mxu1 %v364_v46  ;;  %v329_v45 = vld [vmem:[#allocation2 + $0xe8] sm:$0xff]  ;;  %v345_v46 = vld [vmem:[#allocation2 + $0x10] sm:$0xff] }
  0xe5   : > { %499 = vmatprep.mubr.f32.mxu0 %v1587_v36  ;;  %547 = vmatprep.mubr.f32.mxu1 %v1587_v36 }
  0xe8   : > { %500 = vmatmul.mubr.f32.gmra.mxu0 %v357_v47  ;;  %548 = vmatmul.mubr.f32.gmra.mxu1 %v365_v48 }
  0xe9   : > { %505 = vmatprep.mubr.f32.mxu0 %v1587_v36  ;;  %553 = vmatprep.mubr.f32.mxu1 %v1587_v36 }
  0xec   : > { %506 = vmatmul.mubr.f32.gmra.mxu0 %v358_v49  ;;  %554 = vmatmul.mubr.f32.gmra.mxu1 %v366_v50 }
 0x190   : > { %v465_v53 = vpop.f32.mrf.mxu0  ;;  %v513_v54 = vpop.f32.mrf.mxu1 }
 0x191   : > { %v560_v57 = vadd.f32 %v465_v53, %v319_v51  ;;  %v576_v58 = vadd.f32 %v513_v54, %v335_v52  ;;  %v330_v51 = vld [vmem:[#allocation2 + $0xb8] sm:$0xff]  ;;  %v346_v52 = vld [vmem:[#allocation2 + $0x28] sm:$0xff] }
 0x192   : > { %v467_v59 = vpop.f32.mrf.mxu0  ;;  %v515_v60 = vpop.f32.mrf.mxu1 }
 0x193   : > { %592 = vst [vmem:[#allocation2 + $0xb0] sm:$0xff] %v560_v57  ;;  %608 = vst [vmem:[#allocation2 + $0x38] sm:$0xff] %v576_v58  ;;  %v561_v63 = vadd.f32 %v467_v59, %v320_v55  ;;  %v577_v0 = vadd.f32 %v515_v60, %v336_v56  ;;  %v331_v57 = vld [vmem:[#allocation2 + $0x60] sm:$0xff] }
 0x194   : > { %v471_v1 = vpop.f32.mrf.mxu0  ;;  %v519_v2 = vpop.f32.mrf.mxu1  ;;  %v347_v58 = vld [vmem:[#allocation2 + $0xa0] sm:$0xff] }
 0x195   : > { %593 = vst [vmem:[#allocation2] sm:$0xff] %v561_v63  ;;  %609 = vst [vmem:[#allocation2 + $0x58] sm:$0xff] %v577_v0  ;;  %v562_v5 = vadd.f32 %v471_v1, %v321_v61  ;;  %v578_v6 = vadd.f32 %v519_v2, %v337_v62  ;;  %v332_v63 = vld [vmem:[#allocation2 + $0xf0] sm:$0xff]  ;;  %v348_v0 = vld [vmem:[#allocation2 + $0xf8] sm:$0xff] }
 0x196   : > { %v473_v7 = vpop.f32.mrf.mxu0  ;;  %v521_v8 = vpop.f32.mrf.mxu1 }
 0x197   : > { %594 = vst [vmem:[#allocation2 + $0xd8] sm:$0xff] %v562_v5  ;;  %610 = vst [vmem:[#allocation2 + $0x40] sm:$0xff] %v578_v6  ;;  %v563_v11 = vadd.f32 %v473_v7, %v322_v3  ;;  %v579_v12 = vadd.f32 %v521_v8, %v338_v4  ;;  %v333_v5 = vld [vmem:[#allocation2 + $0x8] sm:$0xff]  ;;  %v349_v6 = vld [vmem:[#allocation2 + $0x20] sm:$0xff] }
 0x198   : > { %v477_v13 = vpop.f32.mrf.mxu0  ;;  %v525_v14 = vpop.f32.mrf.mxu1 }
 0x199   : > { %595 = vst [vmem:[#allocation2 + $0x18] sm:$0xff] %v563_v11  ;;  %611 = vst [vmem:[#allocation2 + $0xc8] sm:$0xff] %v579_v12  ;;  %v564_v17 = vadd.f32 %v477_v13, %v323_v9  ;;  %v580_v18 = vadd.f32 %v525_v14, %v339_v10  ;;  %v334_v11 = vld [vmem:[#allocation2 + $0x78] sm:$0xff] }
 0x19a   : > { %v479_v19 = vpop.f32.mrf.mxu0  ;;  %v527_v20 = vpop.f32.mrf.mxu1  ;;  %v350_v12 = vld [vmem:[#allocation2 + $0x98] sm:$0xff] }
 0x19b   : > { %596 = vst [vmem:[#allocation2 + $0x50] sm:$0xff] %v564_v17  ;;  %612 = vst [vmem:[#allocation2 + $0xe0] sm:$0xff] %v580_v18  ;;  %v565_v23 = vadd.f32 %v479_v19, %v324_v15  ;;  %v581_v24 = vadd.f32 %v527_v20, %v340_v16 }
 0x19c   : > { %v483_v25 = vpop.f32.mrf.mxu0  ;;  %v531_v26 = vpop.f32.mrf.mxu1 }
 0x19d   : > { %597 = vst [vmem:[#allocation2 + $0x68] sm:$0xff] %v565_v23  ;;  %613 = vst [vmem:[#allocation2 + $0x90] sm:$0xff] %v581_v24  ;;  %v566_v29 = vadd.f32 %v483_v25, %v325_v21  ;;  %v582_v30 = vadd.f32 %v531_v26, %v341_v22 }
 0x19e   : > { %v485_v31 = vpop.f32.mrf.mxu0  ;;  %v533_v32 = vpop.f32.mrf.mxu1 }
 0x19f   : > { %598 = vst [vmem:[#allocation2 + $0x30] sm:$0xff] %v566_v29  ;;  %614 = vst [vmem:[#allocation2 + $0x70] sm:$0xff] %v582_v30  ;;  %v567_v35 = vadd.f32 %v485_v31, %v326_v27  ;;  %v583_v36 = vadd.f32 %v533_v32, %v342_v28 }
 0x1a0   : > { %v489_v37 = vpop.f32.mrf.mxu0  ;;  %v537_v38 = vpop.f32.mrf.mxu1 }
 0x1a1   : > { %599 = vst [vmem:[#allocation2 + $0x48] sm:$0xff] %v567_v35  ;;  %615 = vst [vmem:[#allocation2 + $0xc0] sm:$0xff] %v583_v36  ;;  %v568_v41 = vadd.f32 %v489_v37, %v327_v33  ;;  %v584_v42 = vadd.f32 %v537_v38, %v343_v34 }
 0x1a2   : > { %v491_v43 = vpop.f32.mrf.mxu0  ;;  %v539_v44 = vpop.f32.mrf.mxu1 }
 0x1a3   : > { %600 = vst [vmem:[#allocation2 + $0x80] sm:$0xff] %v568_v41  ;;  %616 = vst [vmem:[#allocation2 + $0xa8] sm:$0xff] %v584_v42  ;;  %v569_v47 = vadd.f32 %v491_v43, %v328_v39  ;;  %v585_v48 = vadd.f32 %v539_v44, %v344_v40 }
 0x1a4   : > { %v495_v49 = vpop.f32.mrf.mxu0  ;;  %v543_v50 = vpop.f32.mrf.mxu1 }
 0x1a5   : > { %601 = vst [vmem:[#allocation2 + $0x88] sm:$0xff] %v569_v47  ;;  %617 = vst [vmem:[#allocation2 + $0xd0] sm:$0xff] %v585_v48  ;;  %v570_v53 = vadd.f32 %v495_v49, %v329_v45  ;;  %v586_v54 = vadd.f32 %v543_v50, %v345_v46 }
 0x1a6   : > { %v497_v55 = vpop.f32.mrf.mxu0  ;;  %v545_v56 = vpop.f32.mrf.mxu1 }
 0x1a7   : > { %602 = vst [vmem:[#allocation2 + $0xe8] sm:$0xff] %v570_v53  ;;  %618 = vst [vmem:[#allocation2 + $0x10] sm:$0xff] %v586_v54  ;;  %v571_v59 = vadd.f32 %v497_v55, %v330_v51  ;;  %v587_v60 = vadd.f32 %v545_v56, %v346_v52 }
 0x1a8   : > { %v501_v61 = vpop.f32.mrf.mxu0  ;;  %v549_v62 = vpop.f32.mrf.mxu1 }
 0x1a9   : > { %603 = vst [vmem:[#allocation2 + $0xb8] sm:$0xff] %v571_v59  ;;  %619 = vst [vmem:[#allocation2 + $0x28] sm:$0xff] %v587_v60  ;;  %v572_v1 = vadd.f32 %v501_v61, %v331_v57  ;;  %v588_v2 = vadd.f32 %v549_v62, %v347_v58 }
 0x1aa   : > { %v503_v3 = vpop.f32.mrf.mxu0  ;;  %v551_v4 = vpop.f32.mrf.mxu1 }
 0x1ab   : > { %604 = vst [vmem:[#allocation2 + $0x60] sm:$0xff] %v572_v1  ;;  %620 = vst [vmem:[#allocation2 + $0xa0] sm:$0xff] %v588_v2  ;;  %v573_v7 = vadd.f32 %v503_v3, %v332_v63  ;;  %v589_v8 = vadd.f32 %v551_v4, %v348_v0 }
 0x1ac   : > { %v507_v9 = vpop.f32.mrf.mxu0  ;;  %v555_v10 = vpop.f32.mrf.mxu1 }
 0x1ad   : > { %605 = vst [vmem:[#allocation2 + $0xf0] sm:$0xff] %v573_v7  ;;  %621 = vst [vmem:[#allocation2 + $0xf8] sm:$0xff] %v589_v8  ;;  %v574_v13 = vadd.f32 %v507_v9, %v333_v5  ;;  %v590_v14 = vadd.f32 %v555_v10, %v349_v6  ;;  %627 = sbr.rel (%p1065_p3) target bundleno = 489 (0x1e9), region = 48 }
 0x1ae   : > { %v509_v15 = vpop.f32.mrf.mxu0  ;;  %v557_v16 = vpop.f32.mrf.mxu1 }
 0x1af   : > { %606 = vst [vmem:[#allocation2 + $0x8] sm:$0xff] %v574_v13  ;;  %622 = vst [vmem:[#allocation2 + $0x20] sm:$0xff] %v590_v14  ;;  %v575_v17 = vadd.f32 %v509_v15, %v334_v11  ;;  %v591_v18 = vadd.f32 %v557_v16, %v350_v12 }
 0x1b1   : > { %607 = vst [vmem:[#allocation2 + $0x78] sm:$0xff] %v575_v17  ;;  %623 = vst [vmem:[#allocation2 + $0x98] sm:$0xff] %v591_v18 }
 0x1b2   : > { %v628_v19 = vld [vmem:[#allocation2 + $0xb0] sm:$0xff]  ;;  %v629_v20 = vld [vmem:[#allocation2] sm:$0xff]  ;;  %v630_v21 = vld [vmem:[#allocation2 + $0xd8] sm:$0xff] }
 0x1b3   : > { %660 = vst [vmem:[%s1902_s7] sm:$0xff] %v628_v19  ;;  %v762_v22 = vmul.f32 %v628_v19, %v628_v19  ;;  %661 = vst [vmem:[%s1902_s7 + $0x8] sm:$0xff] %v629_v20  ;;  %v763_v23 = vmul.f32 %v629_v20, %v629_v20  ;;  %v693_v24 = vadd.f32 %v630_v21, %v628_v19  ;;  %v631_v26 = vld [vmem:[#allocation2 + $0x18] sm:$0xff]  ;;  %v632_v27 = vld [vmem:[#allocation2 + $0x50] sm:$0xff] }
 0x1b4   : > { %662 = vst [vmem:[%s1902_s7 + $0x10] sm:$0xff] %v630_v21  ;;  %v764_v25 = vmul.f32 %v630_v21, %v630_v21  ;;  %v633_v28 = vld [vmem:[#allocation2 + $0x68] sm:$0xff]  ;;  %663 = vst [vmem:[%s1902_s7 + $0x18] sm:$0xff] %v631_v26  ;;  %v714_v29 = vadd.f32 %v631_v26, %v629_v20  ;;  %v765_v30 = vmul.f32 %v631_v26, %v631_v26  ;;  %v634_v33 = vld [vmem:[#allocation2 + $0x30] sm:$0xff] }
 0x1b5   : > { %664 = vst [vmem:[%s1902_s7 + $0x20] sm:$0xff] %v632_v27  ;;  %v766_v31 = vmul.f32 %v632_v27, %v632_v27  ;;  %665 = vst [vmem:[%s1902_s7 + $0x28] sm:$0xff] %v633_v28  ;;  %v767_v32 = vmul.f32 %v633_v28, %v633_v28  ;;  %v635_v34 = vld [vmem:[#allocation2 + $0x48] sm:$0xff]  ;;  %v636_v35 = vld [vmem:[#allocation2 + $0x80] sm:$0xff]  ;;  %v694_v37 = vadd.f32 %v693_v24, %v632_v27 }
 0x1b6   : > { %v794_v36 = vadd.f32 %v764_v25, %v762_v22  ;;  %666 = vst [vmem:[%s1902_s7 + $0x30] sm:$0xff] %v634_v33  ;;  %v768_v38 = vmul.f32 %v634_v33, %v634_v33  ;;  %667 = vst [vmem:[%s1902_s7 + $0x38] sm:$0xff] %v635_v34  ;;  %v637_v39 = vld [vmem:[#allocation2 + $0x88] sm:$0xff]  ;;  %v639_v41 = vld [vmem:[#allocation2 + $0xb8] sm:$0xff]  ;;  %v815_v42 = vadd.f32 %v765_v30, %v763_v23 }
 0x1b7   : > { %668 = vst [vmem:[%s1902_s7 + $0x40] sm:$0xff] %v636_v35  ;;  %v638_v40 = vld [vmem:[#allocation2 + $0xe8] sm:$0xff]  ;;  %v715_v43 = vadd.f32 %v714_v29, %v633_v28  ;;  %v769_v44 = vmul.f32 %v635_v34, %v635_v34  ;;  %669 = vst [vmem:[%s1902_s7 + $0x48] sm:$0xff] %v637_v39  ;;  %v640_v45 = vld [vmem:[#allocation2 + $0x60] sm:$0xff]  ;;  %v695_v49 = vadd.f32 %v694_v37, %v634_v33 }
 0x1b8   : > { %670 = vst [vmem:[%s1902_s7 + $0x50] sm:$0xff] %v638_v40  ;;  %671 = vst [vmem:[%s1902_s7 + $0x58] sm:$0xff] %v639_v41  ;;  %v641_v46 = vld [vmem:[#allocation2 + $0xf0] sm:$0xff]  ;;  %v1973_v47 = vld [vmem:[#allocation2 + $0x8] sm:$0xff]  ;;  %v795_v48 = vadd.f32 %v794_v36, %v766_v31  ;;  %v770_v50 = vmul.f32 %v636_v35, %v636_v35  ;;  %v816_v54 = vadd.f32 %v815_v42, %v767_v32 }
 0x1b9   : > { %672 = vst [vmem:[%s1902_s7 + $0x60] sm:$0xff] %v640_v45  ;;  %673 = vst [vmem:[%s1902_s7 + $0x68] sm:$0xff] %v641_v46  ;;  %v643_v51 = vld [vmem:[#allocation2 + $0x78] sm:$0xff]  ;;  %v716_v55 = vadd.f32 %v715_v43, %v635_v34  ;;  %v771_v56 = vmul.f32 %v637_v39, %v637_v39  ;;  %v646_v57 = vld [vmem:[#allocation2 + $0x40] sm:$0xff]  ;;  %v696_v61 = vadd.f32 %v695_v49, %v636_v35 }
 0x1ba   : > { %674 = vst [vmem:[%s1902_s7 + $0x70] sm:$0xff] %v1973_v47  ;;  %v644_v52 = vld [vmem:[#allocation2 + $0x38] sm:$0xff]  ;;  %675 = vst [vmem:[%s1902_s7 + $0x78] sm:$0xff] %v643_v51  ;;  %v647_v58 = vld [vmem:[#allocation2 + $0xc8] sm:$0xff]  ;;  %v796_v60 = vadd.f32 %v795_v48, %v768_v38  ;;  %v772_v62 = vmul.f32 %v638_v40, %v638_v40  ;;  %v817_v2 = vadd.f32 %v816_v54, %v769_v44 }
 0x1bb   : > { %v1979_v53 = vld [vmem:[#allocation2 + $0x58] sm:$0xff]  ;;  %676 = vst [vmem:[%s1902_s7 + $0x80] sm:$0xff] %v644_v52  ;;  %v1985_v59 = vld [vmem:[#allocation2 + $0xe0] sm:$0xff]  ;;  %678 = vst [vmem:[%s1902_s7 + $0x90] sm:$0xff] %v646_v57  ;;  %v717_v3 = vadd.f32 %v716_v55, %v637_v39  ;;  %v773_v4 = vmul.f32 %v639_v41, %v639_v41  ;;  %v697_v9 = vadd.f32 %v696_v61, %v638_v40 }
 0x1bc   : > { %677 = vst [vmem:[%s1902_s7 + $0x88] sm:$0xff] %v1979_v53  ;;  %679 = vst [vmem:[%s1902_s7 + $0x98] sm:$0xff] %v647_v58  ;;  %v649_v63 = vld [vmem:[#allocation2 + $0x90] sm:$0xff]  ;;  %v1991_v1 = vld [vmem:[#allocation2 + $0xc0] sm:$0xff]  ;;  %v797_v8 = vadd.f32 %v796_v60, %v770_v50  ;;  %v774_v10 = vmul.f32 %v640_v45, %v640_v45  ;;  %v818_v14 = vadd.f32 %v817_v2, %v771_v56 }
 0x1bd   : > { %680 = vst [vmem:[%s1902_s7 + $0xa0] sm:$0xff] %v1985_v59  ;;  %v650_v0 = vld [vmem:[#allocation2 + $0x70] sm:$0xff]  ;;  %681 = vst [vmem:[%s1902_s7 + $0xa8] sm:$0xff] %v649_v63  ;;  %v652_v5 = vld [vmem:[#allocation2 + $0xa8] sm:$0xff]  ;;  %v718_v15 = vadd.f32 %v717_v3, %v639_v41  ;;  %v775_v16 = vmul.f32 %v641_v46, %v641_v46  ;;  %v698_v20 = vadd.f32 %v697_v9, %v640_v45 }
 0x1be   : > { %682 = vst [vmem:[%s1902_s7 + $0xb0] sm:$0xff] %v650_v0  ;;  %683 = vst [vmem:[%s1902_s7 + $0xb8] sm:$0xff] %v1991_v1  ;;  %v653_v6 = vld [vmem:[#allocation2 + $0xd0] sm:$0xff]  ;;  %v655_v11 = vld [vmem:[#allocation2 + $0x28] sm:$0xff]  ;;  %v798_v19 = vadd.f32 %v797_v8, %v772_v62  ;;  %v776_v21 = vmul.f32 %v1973_v47, %v1973_v47  ;;  %v819_v22 = vadd.f32 %v818_v14, %v773_v4 }
 0x1bf   : > { %v1997_v7 = vld [vmem:[#allocation2 + $0x10] sm:$0xff]  ;;  %684 = vst [vmem:[%s1902_s7 + $0xc0] sm:$0xff] %v652_v5  ;;  %685 = vst [vmem:[%s1902_s7 + $0xc8] sm:$0xff] %v653_v6  ;;  %v656_v12 = vld [vmem:[#allocation2 + $0xa0] sm:$0xff]  ;;  %v719_v23 = vadd.f32 %v718_v15, %v641_v46  ;;  %v777_v24 = vmul.f32 %v643_v51, %v643_v51  ;;  %v699_v26 = vadd.f32 %v698_v20, %v1973_v47 }
 0x1c0   : > { %686 = vst [vmem:[%s1902_s7 + $0xd0] sm:$0xff] %v1997_v7  ;;  %v2003_v13 = vld [vmem:[#allocation2 + $0xf8] sm:$0xff]  ;;  %687 = vst [vmem:[%s1902_s7 + $0xd8] sm:$0xff] %v655_v11  ;;  %v658_v17 = vld [vmem:[#allocation2 + $0x20] sm:$0xff]  ;;  %v799_v25 = vadd.f32 %v798_v19, %v774_v10  ;;  %v778_v27 = vmul.f32 %v644_v52, %v644_v52  ;;  %v820_v28 = vadd.f32 %v819_v22, %v775_v16 }
 0x1c1   : > { %688 = vst [vmem:[%s1902_s7 + $0xe0] sm:$0xff] %v656_v12  ;;  %689 = vst [vmem:[%s1902_s7 + $0xe8] sm:$0xff] %v2003_v13  ;;  %v659_v18 = vld [vmem:[#allocation2 + $0x98] sm:$0xff]  ;;  %v720_v29 = vadd.f32 %v719_v23, %v643_v51  ;;  %v779_v30 = vmul.f32 %v1979_v53, %v1979_v53  ;;  %v700_v32 = vadd.f32 %v699_v26, %v644_v52 }
 0x1c2   : > { %690 = vst [vmem:[%s1902_s7 + $0xf0] sm:$0xff] %v658_v17  ;;  %691 = vst [vmem:[%s1902_s7 + $0xf8] sm:$0xff] %v659_v18  ;;  %v800_v31 = vadd.f32 %v799_v25, %v776_v21  ;;  %v780_v33 = vmul.f32 %v646_v57, %v646_v57  ;;  %v821_v34 = vadd.f32 %v820_v28, %v777_v24  ;;  %v1588_v25 = vmov 1966171168  }
 0x1c3   : > { %v721_v35 = vadd.f32 %v720_v29, %v1979_v53  ;;  %v781_v36 = vmul.f32 %v647_v58, %v647_v58  ;;  %v701_v38 = vadd.f32 %v700_v32, %v646_v57  ;;  %v782_v39 = vmul.f32 %v1985_v59, %v1985_v59 }
 0x1c4   : > { %v801_v37 = vadd.f32 %v800_v31, %v778_v27  ;;  %v822_v40 = vadd.f32 %v821_v34, %v779_v30  ;;  %v783_v42 = vmul.f32 %v649_v63, %v649_v63  ;;  %v784_v45 = vmul.f32 %v650_v0, %v650_v0 }
 0x1c5   : > { %v722_v41 = vadd.f32 %v721_v35, %v647_v58  ;;  %v702_v44 = vadd.f32 %v701_v38, %v1985_v59  ;;  %v785_v48 = vmul.f32 %v1991_v1, %v1991_v1  ;;  %v786_v51 = vmul.f32 %v652_v5, %v652_v5 }
 0x1c6   : > { %v802_v43 = vadd.f32 %v801_v37, %v780_v33  ;;  %v823_v46 = vadd.f32 %v822_v40, %v781_v36  ;;  %v787_v54 = vmul.f32 %v653_v6, %v653_v6  ;;  %v788_v57 = vmul.f32 %v1997_v7, %v1997_v7 }
 0x1c7   : > { %v723_v47 = vadd.f32 %v722_v41, %v649_v63  ;;  %v703_v50 = vadd.f32 %v702_v44, %v650_v0  ;;  %v789_v60 = vmul.f32 %v655_v11, %v655_v11  ;;  %v790_v63 = vmul.f32 %v656_v12, %v656_v12 }
 0x1c8   : > { %v803_v49 = vadd.f32 %v802_v43, %v782_v39  ;;  %v824_v52 = vadd.f32 %v823_v46, %v783_v42  ;;  %v791_v0 = vmul.f32 %v2003_v13, %v2003_v13  ;;  %v792_v8 = vmul.f32 %v658_v17, %v658_v17 }
 0x1c9   : > { %v724_v53 = vadd.f32 %v723_v47, %v1991_v1  ;;  %v704_v56 = vadd.f32 %v703_v50, %v652_v5  ;;  %v793_v10 = vmul.f32 %v659_v18, %v659_v18  ;;  %v739_v26 = vunpack.c.l.s4 %v1588_v25 }
 0x1ca   : > { %v804_v55 = vadd.f32 %v803_v49, %v784_v45  ;;  %v825_v58 = vadd.f32 %v824_v52, %v785_v48  ;;  %v692_v48 = vld [vmem:[%s1904_s14] ss:$8 sm:$0x3] }
 0x1cb   : > { %v725_v59 = vadd.f32 %v724_v53, %v653_v6  ;;  %v705_v62 = vadd.f32 %v704_v56, %v1997_v7 }
 0x1cc   : > { %v805_v61 = vadd.f32 %v804_v55, %v786_v51  ;;  %v826_v2 = vadd.f32 %v825_v58, %v787_v54  ;;  %v1066_v51 = vld [vmem:[%s1904_s14 + $0x1] ss:$8 sm:$0x3] }
 0x1cd   : > { %v726_v3 = vadd.f32 %v725_v59, %v655_v11  ;;  %v706_v1 = vadd.f32 %v705_v62, %v656_v12  ;;  %v741_v12 = vlaneseq }
 0x1ce   : > { %v806_v4 = vadd.f32 %v805_v61, %v788_v57  ;;  %v827_v9 = vadd.f32 %v826_v2, %v789_v60 }
 0x1cf   : > { %v727_v5 = vadd.f32 %v726_v3, %v2003_v13  ;;  %v707_v15 = vadd.f32 %v706_v1, %v658_v17  ;;  %v742_v33 = vshrl.u32 %v741_v12, 7  ;;  %vm756_vm0 = vcmp.lt.s32.totalorder %v741_v12, 256 }
 0x1d0   : > { %v807_v14 = vadd.f32 %v806_v4, %v790_v63  ;;  %v828_v6 = vadd.f32 %v827_v9, %v791_v0 }
 0x1d1   : > { %v728_v16 = vadd.f32 %v727_v5, %v659_v18  ;;  %v708_v19 = vrot.slane %v707_v15, 4  ;;  %v740_v18 = vunpack.c.0.s8 %v739_v26 }
 0x1d2   : > { %v808_v20 = vadd.f32 %v807_v14, %v792_v8  ;;  %v829_v21 = vadd.f32 %v828_v6, %v793_v10 }
 0x1d3   : > { %v729_v7 = vrot.slane %v728_v16, 4  ;;  %v709_v22 = vadd.f32 %v708_v19, %v707_v15  ;;  %v743_v42 = vsub.s32 %v740_v18, %v742_v33 }
 0x1d4   : > { %v809_v11 = vrot.slane %v808_v20, 4  ;;  %v830_v24 = vrot.slane %v829_v21, 4 }
 0x1d5   : > { %v730_v23 = vadd.f32 %v729_v7, %v728_v16  ;;  %v710_v27 = vrot.slane %v709_v22, 2 }
 0x1d6   : > { %v810_v28 = vadd.f32 %v809_v11, %v808_v20  ;;  %v831_v13 = vadd.f32 %v830_v24, %v829_v21 }
 0x1d7   : > { %v731_v29 = vrot.slane %v730_v23, 2  ;;  %v711_v30 = vadd.f32 %v710_v27, %v709_v22 }
 0x1d8   : > { %v811_v31 = vrot.slane %v810_v28, 2  ;;  %v832_v32 = vrot.slane %v831_v13, 2 }
 0x1d9   : > { %v732_v17 = vadd.f32 %v731_v29, %v730_v23  ;;  %v712_v34 = vrot.slane %v711_v30, 1 }
 0x1da   : > { %v812_v35 = vadd.f32 %v811_v31, %v810_v28  ;;  %v833_v37 = vadd.f32 %v832_v32, %v831_v13 }
 0x1db   : > { %v733_v36 = vrot.slane %v732_v17, 1  ;;  %v713_v38 = vadd.f32 %v712_v34, %v711_v30 }
 0x1dc   : > { %v813_v39 = vrot.slane %v812_v35, 1  ;;  %v834_v41 = vrot.slane %v833_v37, 1 }
 0x1dd   : > { %v734_v40 = vadd.f32 %v733_v36, %v732_v17 }
 0x1de   : > { %v814_v43 = vadd.f32 %v813_v39, %v812_v35  ;;  %v835_v45 = vadd.f32 %v834_v41, %v833_v37 }
 0x1df   : > { %v737_v44 = vcombine.low %v713_v38, %v734_v40 }
 0x1e0   : > { %v838_v47 = vcombine.low %v814_v43, %v835_v45 }
 0x1e1   : > { %v744_v46 = vrot.slane %v737_v44, %v743_v42 }
 0x1e2   : > { %v845_v50 = vrot.slane %v838_v47, %v743_v42 }
 0x1e3   : > { %v751_v49 = vrot.slane %v744_v46, %v743_v42 }
 0x1e4   : > { %v852_v53 = vrot.slane %v845_v50, %v743_v42 }
 0x1e5   : > { %v753_v52 = vadd.f32 %v751_v49, %v692_v48 }
 0x1e6   : > { %v854_v54 = vadd.f32 %v1066_v51, %v852_v53 }
 0x1e7   : > { %758 = vst.msk [vmem:[%s1904_s14] ss:$8 sm:$0x3] %vm756_vm0, %v753_v52 }
 0x1e8   : > { %1067 = vst.msk [vmem:[%s1904_s14 + $0x1] ss:$8 sm:$0x3] %vm756_vm0, %v854_v54 }
 0x1e9 PF: > { %s2247_s11 = sld [smem:[#allocation24_spill]]  ;;  %s879_s22 = sshll.u32 %s1902_s7, 4  ;;  %s2036_s22 = int_to_ptr.vmem [resolvable:$true] %s879_s22 }
 0x1ea   : > { %s2248_s8 = sld [smem:[#allocation23_spill]]  ;;  %s2045_s6 = scalar_lea.sflag [#allocation5], %s260_s4 }
 0x1eb   : > { %s2249_s21 = sld [smem:[#allocation38_spill]]  ;;  %s1358_s18 = scalar_lea.vmem %s2036_s22, 4096 }
 0x1ec   : > { %p1359_p8 = scmp.ne.s32.totalorder %s2036_s22, %s1358_s18  ;;  %s1589_s7 = smov [#allocation8]  }
 0x1ee   : > { %p1360_p9 = pnand %p1359_p8, %p1824_p0 }
 0x1ef   : > { %s1071_s28 = sshll.u32 %s2247_s11, 1 }
 0x1f0   : > { %s1080_s29 = sshll.u32 %s2248_s8, 6  ;;  %p1361_p10 = pneg %p1360_p9 }
 0x1f1   : > { %s876_s23 = sadd.s32 %s1080_s29, %s1071_s28  ;;  %s2250_s1 = smov %s2249_s21 }
 0x1f2   : > { %s1073_s24 = sshll.u32 %s876_s23, 7  ;;  %s1362_s8 = sshll.u32 %s1589_s7, 4  ;;  %s1363_s8 = int_to_ptr.vmem [resolvable:$false] %s1362_s8 }
 0x1f3   : > { %s2041_s12 = scalar_lea.hbm %s2249_s21, %s1073_s24  ;;  %s1364_s28 = scalar_lea.vmem %s1363_s8, 8192 }
 0x1f4   : > { %p1365_p12 = scmp.lt.s32.totalorder %s2036_s22, %s1363_s8  ;;  %p1366_p6 = scmp.lt.s32.totalorder %s1364_s28, %s1358_s18 }
 0x1f6   : > { %p1367_p13 = por %p1366_p6, %p1365_p12 }
 0x1f8   : > { %p1368_p1 = pnand %p1367_p13, %p1361_p10 }
 0x1fa   : > { %1371 = shalt.err (!%p1368_p1)
}
 0x1fb   : > { %s1372_s4 = scalar_lea.hbm %s2041_s12, 4096  ;;  %s1376_s24 = scalar_lea.hbm %s2250_s1, 16384 }
 0x1fc   : > { %p1373_p5 = scmp.ne.s32.totalorder %s2041_s12, %s1372_s4  ;;  %p1377_p11 = scmp.lt.s32.totalorder %s2041_s12, %s2250_s1 }
 0x1fd   : > { %p1378_p2 = scmp.lt.s32.totalorder %s1376_s24, %s1372_s4 }
 0x1fe   : > { %p1374_p7 = pnand %p1373_p5, %p1824_p0 }
 0x1ff   : > { %p1379_p3 = por %p1378_p2, %p1377_p11 }
 0x200   : > { %p1375_p4 = pneg %p1374_p7 }
 0x202   : > { %p1380_p8 = pnand %p1379_p3, %p1375_p4 }
 0x204   : > { %1383 = shalt.err (!%p1380_p8)
}
 0x205   : > { %s1590_s21 = smov 256   ;;  %s2251_s18 = sld [smem:[#allocation16_spill]] }
 0x206   : > { %s1591_s7 = smov 512   ;;  %s1592_s8 = smov 16  }
 0x207   : > { %1118 = dma.vmem_to_hbm [thread:$0]  (%p1824_p0), %s2036_s22, 4096, %s2041_s12, %s2045_s6, %s1590_s21, %s1591_s7, %s1592_s8  }
 0x208   : > { %s1081_s28 = sshll.u32 %s2247_s11, 8  ;;  %s896_s29 = sshll.u32 %s1904_s14, 4  ;;  %s897_s29 = int_to_ptr.vmem [resolvable:$true] %s896_s29 }
 0x209   : > { %s2252_s24 = sld [smem:[#allocation39_spill]]  ;;  %s1384_s27 = scalar_lea.vmem %s897_s29, 256 }
 0x20a   : > { %p1385_p9 = scmp.ne.s32.totalorder %s897_s29, %s1384_s27  ;;  %p2255_p10 = scmp.ne.s32.totalorder %s2233_s3, 0 }
 0x20b   : > { %s2254_s26 = sand.u32 1, %s2251_s18   ;;  %s1593_s20 = smov [#allocation9]  }
 0x20c   : > { %s863_s1 = scalar_lea.sflag [#allocation10], %s2254_s26  ;;  %p1386_p12 = pnand %p1385_p9, %p2255_p10 }
 0x20d   : > { %s1388_s19 = sshll.u32 %s1593_s20, 4  ;;  %s1389_s19 = int_to_ptr.vmem [resolvable:$false] %s1388_s19 }
 0x20e   : > { %p1387_p6 = pneg %p1386_p12  ;;  %s1390_s0 = scalar_lea.vmem %s1389_s19, 512 }
 0x20f   : > { %s2253_s5 = smov %s2252_s24  ;;  %s894_s13 = scalar_lea.hbm %s2252_s24, %s1081_s28 }
 0x210   : > { %p1391_p13 = scmp.lt.s32.totalorder %s897_s29, %s1389_s19  ;;  %p1392_p0 = scmp.lt.s32.totalorder %s1390_s0, %s1384_s27 }
 0x212   : > { %p1393_p1 = por %p1392_p0, %p1391_p13 }
 0x214   : > { %p1394_p5 = pnand %p1393_p1, %p1387_p6 }
 0x216   : > { %1397 = shalt.err (!%p1394_p5)
}
 0x217   : > { %s1398_s25 = scalar_lea.hbm %s894_s13, 256  ;;  %s1402_s22 = scalar_lea.hbm %s2253_s5, 512 }
 0x218   : > { %p1399_p7 = scmp.ne.s32.totalorder %s894_s13, %s1398_s25  ;;  %p1403_p2 = scmp.lt.s32.totalorder %s894_s13, %s2253_s5 }
 0x219   : > { %p1404_p3 = scmp.lt.s32.totalorder %s1402_s22, %s1398_s25 }
 0x21a   : > { %p1400_p4 = pnand %p1399_p7, %p2255_p10 }
 0x21b   : > { %p1405_p8 = por %p1404_p3, %p1403_p2 }
 0x21c   : > { %p1401_p11 = pneg %p1400_p4 }
 0x21e   : > { %p1406_p9 = pnand %p1405_p8, %p1401_p11 }
 0x220   : > { %1409 = shalt.err (!%p1406_p9)
}
 0x221   : > { %1119 = dma.vmem_to_hbm [thread:$0]  (%p2255_p10), %s897_s29, 256, %s894_s13, %s863_s1  }
 0x222 PF: > { %p1137_p12 = scmp.ge.s32.totalorder %s1576_s30, 2  ;;  %s908_s0 = sand.u32 1, %s1516_s15  }
 0x223   : > { %p2256_p6 = scmp.ne.s32.totalorder %s2230_s9, 0  ;;  %s909_s19 = scalar_lea.sflag [#allocation5], %s908_s0 }
 0x225   : > { %p1130_p13 = pnand %p1137_p12, %p2256_p6 }
 0x227   : > { %p1131_p0 = pneg %p1130_p13 }
 0x229   : > { %1495 = dma.done.wait (%p1131_p0), %s909_s19, 4096  }
 0x22a   : > { %1497 = vsyncadd (%p1131_p0), %s909_s19, 4294963200  ;;  %s2257_s20 = sld [smem:[#allocation15_spill]]  ;;  %p2258_p1 = scmp.ne.s32.totalorder %s2234_s10, 0 }
 0x22c   : > { %p1133_p5 = pnand %p1137_p12, %p2258_p1 }
 0x22e   : > { %p1134_p7 = pneg %p1133_p5 }
 0x230   : > { %s917_s27 = sand.u32 1, %s2257_s20  }
 0x231   : > { %s918_s3 = scalar_lea.sflag [#allocation10], %s917_s27 }
 0x232   : > { %1499 = dma.done.wait (%p1134_p7), %s918_s3, 256  }
 0x233   : > { %1501 = vsyncadd (%p1134_p7), %s918_s3, 4294967040  ;;  %s26_s30 = sadd.s32 1, %s1576_s30   ;;  %s2260_s12 = sld [smem:[#allocation16_spill]] }
 0x234   : > { %p2095_p10 = scmp.ge.s32.totalorder %s26_s30, 10   ;;  %s2261_s13 = sld [smem:[#allocation17_spill]] }
 0x235   : > { %s2262_s9 = sld [smem:[#allocation35_spill]]  ;;  %s2275_s14 = smov %s2288_s2 }
 0x236   : > { %s2263_s18 = sld [smem:[#allocation18_spill]]  ;;  %s2276_s15 = smov %s1520_s16 }
 0x237   : > { %s2264_s19 = sld [smem:[#allocation19_spill]]  ;;  %s2277_s16 = smov %s1524_s17 }
 0x238   : > { %s2265_s20 = sld [smem:[#allocation34_spill]] }
 0x239   : > { %s2266_s21 = sld [smem:[#allocation20_spill]] }
 0x23a   : > { %s2267_s22 = sld [smem:[#allocation21_spill]] }
 0x23b   : > { %s2268_s23 = sld [smem:[#allocation32_spill]]  ;;  %s2278_s17 = smov %s2262_s9 }
 0x23c   : > { %s2269_s24 = sld [smem:[#allocation25_spill]] }
 0x23d   : > { %s2270_s25 = sld [smem:[#allocation26_spill]]  ;;  %25 = sbr.rel (!%p2095_p10) target bundleno = 22 (0x16), region = 116 }
 0x23e   : > { %s2271_s26 = sld [smem:[#allocation27_spill]] }
 0x23f   : > { %s2272_s27 = sld [smem:[#allocation28_spill]] }
 0x240   : > { %s2273_s28 = sld [smem:[#allocation29_spill]] }
 0x241   : > { %s2274_s29 = sld [smem:[#allocation33_spill]] }
 0x242   :  { %923 = vsyncpa [#allocation4], 1 }
 0x243   :  { %925 = vsyncpa [#allocation4 + $0x1], 1 }
 0x244   :  { %926 = vsyncpa [#allocation7], 1 }
 0x245   :  { %928 = vsyncpa [#allocation7 + $0x1], 1 }
 0x246   :  { %929 = vsyncpa [#allocation5], 1 }
 0x247   :  { %931 = vsyncpa [#allocation5 + $0x1], 1 }
 0x248   :  { %932 = vsyncpa [#allocation10], 1 }
 0x249   :  { %934 = vsyncpa [#allocation10 + $0x1], 1 }

</bundles_post_ra>
